<compile_context>
chip_gen: v5e
topology: v5e:2x2
jax: 0.10.0
libtpu: 0.0.40
codegen_flags: <defaults>
</compile_context>

<pallas_src>
import jax
import jax.numpy as jnp
from jax.experimental import pallas as pl
from jax.experimental.pallas import tpu as pltpu

LANE = 128  # TPU lane width

# Resolved lazily on first call: whether the installed Pallas lowering accepts
# single-buffered (pl.Buffered(1)) constant-index operands.
_SINGLE_BUFFER_WEIGHTS = None


def mlp_kernel(x_ref, w1_ref, b1_ref, w2_ref, b2_ref, o_ref):
    # Cast x to bf16 on the VPU (hidden under DMA/MXU); MXU accumulates in f32.
    x = x_ref[...].astype(jnp.bfloat16)
    h = jnp.dot(x, w1_ref[...], preferred_element_type=jnp.float32)
    h = jnp.maximum(h + b1_ref[...], 0.0)                       # fc_1 bias + ReLU (f32)
    y = jnp.dot(h.astype(jnp.bfloat16), w2_ref[...],
                preferred_element_type=jnp.float32)
    y = jnp.maximum(y + b2_ref[...], 0.0)                       # head bias + ReLU (f32)
    o_ref[...] = y.astype(o_ref.dtype)


def prepare_mlp_params(w1, b1, w2, b2):
    """One-time parameter prep (hoisted out of the per-call path).

    w1: [insize, node], b1: [node], w2: [node, out], b2: [out]
    (weights already transposed to [in, out] so the kernel computes x @ W + b).
    Returns bf16 weights, f32 [1, N] biases; head weight/bias zero-padded so the
    kernel's output feature dim is a multiple of 128 (lane-dense stores).
    relu(0) = 0 in the padding keeps results exact after slicing.
    """
    insize, node = w1.shape
    out = w2.shape[1]
    out_pad = ((out + LANE - 1) // LANE) * LANE
    if out_pad != out:
        w2 = jnp.pad(w2, ((0, 0), (0, out_pad - out)))
        b2 = jnp.pad(b2, ((0, out_pad - out),))
    return {
        "w1": w1.astype(jnp.bfloat16),                    # [insize, node]
        "b1": b1.reshape(1, node).astype(jnp.float32),    # [1, node]
        "w2": w2.astype(jnp.bfloat16),                    # [node, out_pad]
        "b2": b2.reshape(1, out_pad).astype(jnp.float32), # [1, out_pad]
        "out": out,
    }


def _choose_block_b(B, insize, node, out_pad, cap=256):
    # One grid step for small batches (block == full dim is always legal);
    # otherwise 16-aligned tiles (bf16 sublane tile is (16,128)) capped at 256
    # rows: fills the 128/256-row MXU, keeps the tile working set inside v5e's
    # scoped VMEM / v7x's 64 MiB, and yields >=2 "parallel" grid steps for
    # B >= 512 so both v7x TensorCores are engaged.
    if B <= cap:
        return B
    block_b = max(16, (cap // 16) * 16)
    # Per-row bytes: double-buffered f32 x & out tiles + f32/bf16 hidden scratch.
    per_row = insize * (2 * 4 + 2) + node * (4 + 2) + out_pad * (2 * 4)
    budget = 24 * 1024 * 1024
    while block_b > 16 and block_b * per_row > budget:
        block_b //= 2
    return max(16, block_b)


def _vmem_limit_bytes(block_b, insize, node, out_pad, weight_bufs=2):
    tiles = block_b * insize * 4 * 2 + block_b * out_pad * 4 * 2
    weights = (insize * node * 2 + node * 4 + node * out_pad * 2 + out_pad * 4) * weight_bufs
    scratch = block_b * (node * (4 + 2) + insize * 2)   # f32 h + bf16 h + bf16 x
    est = tiles + weights + scratch
    # Generous headroom for compiler temporaries; capped at v7x physical VMEM.
    return int(min(max(4 * est, 16 * 1024 * 1024), 64 * 1024 * 1024))


def _weight_spec(shape, single_buffer):
    if single_buffer:
        # Constant block index -> one VMEM buffer is enough; halves the weight
        # VMEM footprint vs. the default double buffering at zero pipeline cost.
        return pl.BlockSpec(shape, lambda i: (0, 0), pipeline_mode=pl.Buffered(1))
    return pl.BlockSpec(shape, lambda i: (0, 0))


def _build_mlp_call(B, insize, node, out_pad, block_b, out_dtype,
                    single_buffer, vmem_limit):
    flops = 2 * B * (insize * node + node * out_pad)
    bytes_accessed = (B * insize * 4
                      + insize * node * 2 + node * 4
                      + node * out_pad * 2 + out_pad * 4
                      + B * out_pad * jnp.dtype(out_dtype).itemsize)
    return pl.pallas_call(
        mlp_kernel,
        out_shape=jax.ShapeDtypeStruct((B, out_pad), out_dtype),
        grid_spec=pltpu.PrefetchScalarGridSpec(
            num_scalar_prefetch=0,
            grid=(pl.cdiv(B, block_b),),
            in_specs=[
                # batch-tiled activations (f32; cast to bf16 inside the kernel)
                pl.BlockSpec((block_b, insize), lambda i: (i, 0)),
                # weights / biases: VMEM-resident, same block every grid step
                _weight_spec((insize, node), single_buffer),
                _weight_spec((1, node), single_buffer),
                _weight_spec((node, out_pad), single_buffer),
                _weight_spec((1, out_pad), single_buffer),
            ],
            out_specs=pl.BlockSpec((block_b, out_pad), lambda i: (i, 0)),
        ),
        compiler_params=pltpu.CompilerParams(
            dimension_semantics=("parallel",),
            vmem_limit_bytes=vmem_limit,
        ),
        cost_estimate=pl.CostEstimate(
            flops=flops, transcendentals=0, bytes_accessed=bytes_accessed),
    )


def mlp_forward(x, params, *, block_b_cap=256, return_padded=False):
    """Fused relu(relu(x @ w1 + b1) @ w2 + b2) using pre-prepped params.

    x: [B, insize] f32; params: output of prepare_mlp_params.
    Returns [B, out] (or the lane-padded [B, out_pad] slab if return_padded).
    """
    global _SINGLE_BUFFER_WEIGHTS
    B, insize = x.shape
    node = params["w1"].shape[1]
    out_pad = params["w2"].shape[1]
    out = params["out"]
    out_dtype = x.dtype

    block_b = _choose_block_b(B, insize, node, out_pad, cap=block_b_cap)
    vmem_limit = _vmem_limit_bytes(block_b, insize, node, out_pad, weight_bufs=2)
    args = (x, params["w1"], params["b1"], params["w2"], params["b2"])

    if _SINGLE_BUFFER_WEIGHTS is None:
        try:
            y_pad = _build_mlp_call(B, insize, node, out_pad, block_b, out_dtype,
                                    True, vmem_limit)(*args)
            _SINGLE_BUFFER_WEIGHTS = True
        except Exception:
            # This Pallas build rejects Buffered(1); fall back (and cache) to
            # default double buffering for the constant-index weight operands.
            _SINGLE_BUFFER_WEIGHTS = False
            y_pad = _build_mlp_call(B, insize, node, out_pad, block_b, out_dtype,
                                    False, vmem_limit)(*args)
    else:
        y_pad = _build_mlp_call(B, insize, node, out_pad, block_b, out_dtype,
                                _SINGLE_BUFFER_WEIGHTS, vmem_limit)(*args)

    if return_padded or out_pad == out:
        return y_pad
    return y_pad[:, :out]  # slice off lane padding for the [B, out] result


def init_linear_params(key, fan_in, fan_out, dtype=jnp.float32):
    """Mimics torch.nn.Linear default init (uniform +-1/sqrt(fan_in)).
    Weight returned already transposed to [in, out]."""
    kw, kb = jax.random.split(key)
    bound = 1.0 / jnp.sqrt(fan_in)
    w = jax.random.uniform(kw, (fan_in, fan_out), dtype, minval=-bound, maxval=bound)
    b = jax.random.uniform(kb, (fan_out,), dtype, minval=-bound, maxval=bound)
    return w, b


if __name__ == "__main__":
    # Shapes consistent with the module defaults:
    # insize=32 (input features), node_size=128, outsize=64, batch=16.
    B, INSIZE, NODE, OUTSIZE = 16, 32, 128, 64

    key = jax.random.PRNGKey(0)
    kx, k1, k2 = jax.random.split(key, 3)

    x = jax.random.normal(kx, (B, INSIZE), jnp.float32)
    w1, b1 = init_linear_params(k1, INSIZE, NODE)
    w2, b2 = init_linear_params(k2, NODE, OUTSIZE)

    # One-time parameter prep (hoisted out of the per-call path).
    params = prepare_mlp_params(w1, b1, w2, b2)

    out = mlp_forward(x, params)
    out = jax.block_until_ready(out)

    # Reference mirroring the kernel's bf16-matmul / f32-accumulate math.
    bf = lambda a: a.astype(jnp.bfloat16).astype(jnp.float32)
    h_ref = jnp.maximum(bf(x) @ bf(w1) + b1, 0.0)
    y_ref = jnp.maximum(bf(h_ref) @ bf(w2) + b2, 0.0)

    assert out.shape == (B, OUTSIZE)
    assert out.dtype == jnp.float32
    assert jnp.allclose(out, y_ref, atol=1e-3, rtol=1e-3), (
        float(jnp.max(jnp.abs(out - y_ref))))

    # Loose sanity check against the exact f32 reference (bf16 quantization).
    h_f32 = jnp.maximum(x @ w1 + b1, 0.0)
    y_f32 = jnp.maximum(h_f32 @ w2 + b2, 0.0)
    assert jnp.allclose(out, y_f32, atol=2e-2, rtol=2e-2)

    print("KERNEL_OK")
</pallas_src>

<mosaic_0001>
module attributes {stable_mosaic.version = 11 : i64} {
  func.func @mlp_kernel(%arg0: i32, %arg1: memref<16x32xf32, #tpu.memory_space<vmem>>, %arg2: memref<32x128xbf16, #tpu.memory_space<vmem>>, %arg3: memref<1x128xf32, #tpu.memory_space<vmem>>, %arg4: memref<128x128xbf16, #tpu.memory_space<vmem>>, %arg5: memref<1x128xf32, #tpu.memory_space<vmem>>, %arg6: memref<16x128xf32, #tpu.memory_space<vmem>>) attributes {dimension_semantics = [#tpu.dimension_semantics<parallel>], iteration_bounds = array<i64: 1>, scalar_prefetch = 0 : i64, scratch_operands = 0 : i64, tpu.core_type = #tpu.core_type<tc>, window_params = [{transform_indices = @transform_0, window_bounds = array<i64: 16, 32>}, {pipeline_mode = #tpu.pipeline_mode<synchronous>, transform_indices = @transform_1, window_bounds = array<i64: 32, 128>}, {pipeline_mode = #tpu.pipeline_mode<synchronous>, transform_indices = @transform_2, window_bounds = array<i64: 1, 128>}, {pipeline_mode = #tpu.pipeline_mode<synchronous>, transform_indices = @transform_3, window_bounds = array<i64: 128, 128>}, {pipeline_mode = #tpu.pipeline_mode<synchronous>, transform_indices = @transform_4, window_bounds = array<i64: 1, 128>}, {transform_indices = @transform_5, window_bounds = array<i64: 16, 128>}]} {
    %c0 = arith.constant 0 : index
    %c0_0 = arith.constant 0 : index
    %0 = vector.load %arg1[%c0, %c0_0] : memref<16x32xf32, #tpu.memory_space<vmem>>, vector<16x32xf32>
    %1 = arith.truncf %0 : vector<16x32xf32> to vector<16x32xbf16>
    %c0_1 = arith.constant 0 : index
    %c0_2 = arith.constant 0 : index
    %2 = vector.load %arg2[%c0_1, %c0_2] : memref<32x128xbf16, #tpu.memory_space<vmem>>, vector<32x128xbf16>
    %cst = arith.constant dense<0.000000e+00> : vector<16x128xf32>
    %3 = tpu.matmul %1, %2, %cst {dimension_numbers = #tpu.dot_dimension_numbers<[1], [0], [0], [1], [0, 0, 1, 1], [], []>} : vector<16x32xbf16>, vector<32x128xbf16>, vector<16x128xf32> -> vector<16x128xf32>
    %c0_3 = arith.constant 0 : index
    %c0_4 = arith.constant 0 : index
    %4 = vector.load %arg3[%c0_3, %c0_4] : memref<1x128xf32, #tpu.memory_space<vmem>>, vector<1x128xf32>
    %5 = vector.broadcast %4 : vector<1x128xf32> to vector<16x128xf32>
    %6 = arith.addf %3, %5 : vector<16x128xf32>
    %cst_5 = arith.constant 0.000000e+00 : f32
    %7 = vector.broadcast %cst_5 : f32 to vector<16x128xf32>
    %8 = arith.maximumf %6, %7 : vector<16x128xf32>
    %9 = arith.truncf %8 : vector<16x128xf32> to vector<16x128xbf16>
    %c0_6 = arith.constant 0 : index
    %c0_7 = arith.constant 0 : index
    %10 = vector.load %arg4[%c0_6, %c0_7] : memref<128x128xbf16, #tpu.memory_space<vmem>>, vector<128x128xbf16>
    %cst_8 = arith.constant dense<0.000000e+00> : vector<16x128xf32>
    %11 = tpu.matmul %9, %10, %cst_8 {dimension_numbers = #tpu.dot_dimension_numbers<[1], [0], [0], [1], [0, 0, 1, 1], [], []>} : vector<16x128xbf16>, vector<128x128xbf16>, vector<16x128xf32> -> vector<16x128xf32>
    %c0_9 = arith.constant 0 : index
    %c0_10 = arith.constant 0 : index
    %12 = vector.load %arg5[%c0_9, %c0_10] : memref<1x128xf32, #tpu.memory_space<vmem>>, vector<1x128xf32>
    %13 = vector.broadcast %12 : vector<1x128xf32> to vector<16x128xf32>
    %14 = arith.addf %11, %13 : vector<16x128xf32>
    %cst_11 = arith.constant 0.000000e+00 : f32
    %15 = vector.broadcast %cst_11 : f32 to vector<16x128xf32>
    %16 = arith.maximumf %14, %15 : vector<16x128xf32>
    %c0_12 = arith.constant 0 : index
    %c0_13 = arith.constant 0 : index
    %17 = vector.load %arg6[%c0_12, %c0_13] : memref<16x128xf32, #tpu.memory_space<vmem>>, vector<16x128xf32>
    tpu.vector_store %arg6[%c0_12, %c0_13], %16 {strides = array<i32>} : memref<16x128xf32, #tpu.memory_space<vmem>>, vector<16x128xf32>,
    return
  }
  func.func @transform_0(%arg0: i32) -> (i32, i32) {
    %c0_i32 = arith.constant 0 : i32
    %c0_i32_0 = arith.constant 0 : i32
    return %arg0, %c0_i32 : i32, i32
  }
  func.func @transform_1(%arg0: i32) -> (i32, i32) {
    %c0_i32 = arith.constant 0 : i32
    %c0_i32_0 = arith.constant 0 : i32
    %c0_i32_1 = arith.constant 0 : i32
    return %c0_i32, %c0_i32_0 : i32, i32
  }
  func.func @transform_2(%arg0: i32) -> (i32, i32) {
    %c0_i32 = arith.constant 0 : i32
    %c0_i32_0 = arith.constant 0 : i32
    %c0_i32_1 = arith.constant 0 : i32
    return %c0_i32, %c0_i32_0 : i32, i32
  }
  func.func @transform_3(%arg0: i32) -> (i32, i32) {
    %c0_i32 = arith.constant 0 : i32
    %c0_i32_0 = arith.constant 0 : i32
    %c0_i32_1 = arith.constant 0 : i32
    return %c0_i32, %c0_i32_0 : i32, i32
  }
  func.func @transform_4(%arg0: i32) -> (i32, i32) {
    %c0_i32 = arith.constant 0 : i32
    %c0_i32_0 = arith.constant 0 : i32
    %c0_i32_1 = arith.constant 0 : i32
    return %c0_i32, %c0_i32_0 : i32, i32
  }
  func.func @transform_5(%arg0: i32) -> (i32, i32) {
    %c0_i32 = arith.constant 0 : i32
    %c0_i32_0 = arith.constant 0 : i32
    return %arg0, %c0_i32 : i32, i32
  }
}

module attributes {stable_mosaic.version = 11 : i64} {
  func.func @mlp_kernel(%arg0: i32, %arg1: memref<16x32xf32, #tpu.memory_space<vmem>>, %arg2: memref<32x128xbf16, #tpu.memory_space<vmem>>, %arg3: memref<1x128xf32, #tpu.memory_space<vmem>>, %arg4: memref<128x128xbf16, #tpu.memory_space<vmem>>, %arg5: memref<1x128xf32, #tpu.memory_space<vmem>>, %arg6: memref<16x128xf32, #tpu.memory_space<vmem>>) attributes {dimension_semantics = [#tpu.dimension_semantics<parallel>], iteration_bounds = array<i64: 1>, scalar_prefetch = 0 : i64, scratch_operands = 0 : i64, tpu.core_type = #tpu.core_type<tc>, window_params = [{transform_indices = @transform_0, window_bounds = array<i64: 16, 32>}, {pipeline_mode = #tpu.pipeline_mode<synchronous>, transform_indices = @transform_1, window_bounds = array<i64: 32, 128>}, {pipeline_mode = #tpu.pipeline_mode<synchronous>, transform_indices = @transform_2, window_bounds = array<i64: 1, 128>}, {pipeline_mode = #tpu.pipeline_mode<synchronous>, transform_indices = @transform_3, window_bounds = array<i64: 128, 128>}, {pipeline_mode = #tpu.pipeline_mode<synchronous>, transform_indices = @transform_4, window_bounds = array<i64: 1, 128>}, {transform_indices = @transform_5, window_bounds = array<i64: 16, 128>}]} {
    %c0 = arith.constant 0 : index
    %c0_0 = arith.constant 0 : index
    %0 = vector.load %arg1[%c0, %c0_0] : memref<16x32xf32, #tpu.memory_space<vmem>>, vector<16x32xf32>
    %1 = arith.truncf %0 : vector<16x32xf32> to vector<16x32xbf16>
    %c0_1 = arith.constant 0 : index
    %c0_2 = arith.constant 0 : index
    %2 = vector.load %arg2[%c0_1, %c0_2] : memref<32x128xbf16, #tpu.memory_space<vmem>>, vector<32x128xbf16>
    %cst = arith.constant dense<0.000000e+00> : vector<16x128xf32>
    %3 = tpu.matmul %1, %2, %cst {dimension_numbers = #tpu.dot_dimension_numbers<[1], [0], [0], [1], [0, 0, 1, 1], [], []>} : vector<16x32xbf16>, vector<32x128xbf16>, vector<16x128xf32> -> vector<16x128xf32>
    %c0_3 = arith.constant 0 : index
    %c0_4 = arith.constant 0 : index
    %4 = vector.load %arg3[%c0_3, %c0_4] : memref<1x128xf32, #tpu.memory_space<vmem>>, vector<1x128xf32>
    %5 = vector.broadcast %4 : vector<1x128xf32> to vector<16x128xf32>
    %6 = arith.addf %3, %5 : vector<16x128xf32>
    %cst_5 = arith.constant 0.000000e+00 : f32
    %7 = vector.broadcast %cst_5 : f32 to vector<16x128xf32>
    %8 = arith.maximumf %6, %7 : vector<16x128xf32>
    %9 = arith.truncf %8 : vector<16x128xf32> to vector<16x128xbf16>
    %c0_6 = arith.constant 0 : index
    %c0_7 = arith.constant 0 : index
    %10 = vector.load %arg4[%c0_6, %c0_7] : memref<128x128xbf16, #tpu.memory_space<vmem>>, vector<128x128xbf16>
    %cst_8 = arith.constant dense<0.000000e+00> : vector<16x128xf32>
    %11 = tpu.matmul %9, %10, %cst_8 {dimension_numbers = #tpu.dot_dimension_numbers<[1], [0], [0], [1], [0, 0, 1, 1], [], []>} : vector<16x128xbf16>, vector<128x128xbf16>, vector<16x128xf32> -> vector<16x128xf32>
    %c0_9 = arith.constant 0 : index
    %c0_10 = arith.constant 0 : index
    %12 = vector.load %arg5[%c0_9, %c0_10] : memref<1x128xf32, #tpu.memory_space<vmem>>, vector<1x128xf32>
    %13 = vector.broadcast %12 : vector<1x128xf32> to vector<16x128xf32>
    %14 = arith.addf %11, %13 : vector<16x128xf32>
    %cst_11 = arith.constant 0.000000e+00 : f32
    %15 = vector.broadcast %cst_11 : f32 to vector<16x128xf32>
    %16 = arith.maximumf %14, %15 : vector<16x128xf32>
    %c0_12 = arith.constant 0 : index
    %c0_13 = arith.constant 0 : index
    %17 = vector.load %arg6[%c0_12, %c0_13] : memref<16x128xf32, #tpu.memory_space<vmem>>, vector<16x128xf32>
    tpu.vector_store %arg6[%c0_12, %c0_13], %16 {strides = array<i32>} : memref<16x128xf32, #tpu.memory_space<vmem>>, vector<16x128xf32>,
    return
  }
  func.func @transform_0(%arg0: i32) -> (i32, i32) {
    %c0_i32 = arith.constant 0 : i32
    %c0_i32_0 = arith.constant 0 : i32
    return %arg0, %c0_i32 : i32, i32
  }
  func.func @transform_1(%arg0: i32) -> (i32, i32) {
    %c0_i32 = arith.constant 0 : i32
    %c0_i32_0 = arith.constant 0 : i32
    %c0_i32_1 = arith.constant 0 : i32
    return %c0_i32, %c0_i32_0 : i32, i32
  }
  func.func @transform_2(%arg0: i32) -> (i32, i32) {
    %c0_i32 = arith.constant 0 : i32
    %c0_i32_0 = arith.constant 0 : i32
    %c0_i32_1 = arith.constant 0 : i32
    return %c0_i32, %c0_i32_0 : i32, i32
  }
  func.func @transform_3(%arg0: i32) -> (i32, i32) {
    %c0_i32 = arith.constant 0 : i32
    %c0_i32_0 = arith.constant 0 : i32
    %c0_i32_1 = arith.constant 0 : i32
    return %c0_i32, %c0_i32_0 : i32, i32
  }
  func.func @transform_4(%arg0: i32) -> (i32, i32) {
    %c0_i32 = arith.constant 0 : i32
    %c0_i32_0 = arith.constant 0 : i32
    %c0_i32_1 = arith.constant 0 : i32
    return %c0_i32, %c0_i32_0 : i32, i32
  }
  func.func @transform_5(%arg0: i32) -> (i32, i32) {
    %c0_i32 = arith.constant 0 : i32
    %c0_i32_0 = arith.constant 0 : i32
    return %arg0, %c0_i32 : i32, i32
  }
}

</mosaic_0001>

<bundles_post_ra>
// kernel: tpu_custom_call.1
= control target key start
LH: loop header
LB: loop body
LE: loop exit
PB: predicated region body
PF: predicated region fallthrough
CT: control target
= control target key end

     0   :  { %10 = vsyncpa [#allocation3], 0  ;;  %s444_s0 = inlined_call_operand.hbm [shape: f32[16,32], index: 0, kind: input, shape index: {}]   ;;  %s445_s1 = inlined_call_operand.hbm [shape: bf16[32,128], index: 1, kind: input, shape index: {}]   ;;  %s446_s2 = inlined_call_operand.vmem [shape: f32[1,128], index: 2, kind: input, shape index: {}]   ;;  %s447_s3 = inlined_call_operand.hbm [shape: bf16[128,128], index: 3, kind: input, shape index: {}]   ;;  %s448_s4 = inlined_call_operand.vmem [shape: f32[1,128], index: 4, kind: input, shape index: {}]   ;;  %s449_s5 = inlined_call_operand.hbm [shape: f32[16,128], index: 5, kind: output, shape index: {}]  }
   0x1   :  { %11 = vsyncpa [#allocation6], 0  ;;  %s30_s20 = sshll.u32 %s445_s1, 4  ;;  %s31_s20 = int_to_ptr.hbm [resolvable:$true] %s30_s20 }
   0x2   :  { %12 = vsyncpa [#allocation4], 0  ;;  %s382_s21 = smov [#allocation5]   ;;  %s17_s25 = sshll.u32 %s444_s0, 4  ;;  %s18_s25 = int_to_ptr.hbm [resolvable:$true] %s17_s25 }
   0x3   :  { %s32_s22 = sshll.u32 %s382_s21, 4  ;;  %s383_s26 = smov 64   ;;  %s33_s22 = int_to_ptr.vmem [resolvable:$true] %s32_s22 }
   0x4   :  { %s384_s27 = smov 4   ;;  %s385_s28 = smov [#allocation2]  }
   0x5   :  { %38 = dma.hbm_to_vmem [thread:$0]  %s31_s20, 256, %s33_s22, [#allocation6], %s383_s26, %s383_s26, %s384_s27  }
   0x6   :  { %s19_s29 = sshll.u32 %s385_s28, 4  ;;  %s386_s30 = smov 128   ;;  %s20_s29 = int_to_ptr.vmem [resolvable:$true] %s19_s29 }
   0x7   :  { %s387_s6 = smov 8   ;;  %s45_s8 = sshll.u32 %s447_s3, 4  ;;  %s46_s8 = int_to_ptr.hbm [resolvable:$true] %s45_s8 }
   0x8   :  { %25 = dma.hbm_to_vmem [thread:$0]  %s18_s25, 256, %s20_s29, [#allocation3], %s386_s30, %s386_s30, %s387_s6  }
   0x9   :  { %s388_s9 = smov [#allocation7]  }
   0xa   :  { %s47_s0 = sshll.u32 %s388_s9, 4  ;;  %s48_s0 = int_to_ptr.vmem [resolvable:$true] %s47_s0 }
   0xb   :  { %53 = dma.hbm_to_vmem [thread:$0]  %s46_s8, 1024, %s48_s0, [#allocation6], %s383_s26, %s383_s26, %s384_s27  }
   0xc   :  { %376 = dma.done.wait [#allocation3], 256  }
   0xd   :  { %377 = vsyncadd [#allocation3], 4294967040 }
   0xe   :  { %378 = dma.done.wait [#allocation6], 1280  }
   0xf   :  { %379 = vsyncadd [#allocation6], 4294966016  ;;  %v261_v0 = vld [vmem:[#allocation5 + $0x8] sm:$0xff]  ;;  %v260_v1 = vld [vmem:[#allocation5] sm:$0xff]  ;;  %vm92_vm0 = vcmask 261120   ;;  %s389_s13 = smov [#allocation8]  }
  0x10   :  { %v269_v2 = vld [vmem:[#allocation7 + $0x38] sm:$0xff]  ;;  %102 = vmatpush.bf16.msra.mxu0 %v261_v0  ;;  %v69_v3 = vld [vmem:[#allocation2] sm:$0xff]  ;;  %v70_v4 = vld [vmem:[#allocation2 + $0x8] sm:$0xff]  ;;  %s203_s14 = sshll.u32 %s389_s13, 4  ;;  %s205_s16 = sshll.u32 %s449_s5, 4  ;;  %s204_s14 = int_to_ptr.vmem [resolvable:$true] %s203_s14  ;;  %s206_s16 = int_to_ptr.hbm [resolvable:$true] %s205_s16 }
  0x11   :  { %181 = vmatpush.bf16.msra.mxu1 %v269_v2  ;;  %v268_v5 = vld [vmem:[#allocation7 + $0x30] sm:$0xff]  ;;  %v71_v6 = vpack.c.bf16 %v70_v4, %v69_v3  ;;  %v267_v7 = vld [vmem:[#allocation7 + $0x28] sm:$0xff]  ;;  %v266_v8 = vld [vmem:[#allocation7 + $0x20] sm:$0xff] }
  0x12   :  { %v265_v9 = vld [vmem:[#allocation7 + $0x18] sm:$0xff]  ;;  %v264_v10 = vld [vmem:[#allocation7 + $0x10] sm:$0xff]  ;;  %v263_v11 = vld [vmem:[#allocation7 + $0x8] sm:$0xff] }
  0x13   :  { %v262_v12 = vld [vmem:[#allocation7] sm:$0xff] }
  0x14   :  { %103 = vmatpush.bf16.msra.mxu0 %v260_v1  ;;  %v278_v14 = vld [vmem:[%s446_s2] ss:$0 sm:$0xff] }
  0x15   :  { %182 = vmatpush.bf16.msra.mxu1 %v268_v5  ;;  %v279_v21 = vld [vmem:[%s448_s4] ss:$0 sm:$0xff] }
  0x17   :  { %227 = vmatmul.msk.bf16.vlgmr.msra.gmra.mxu0 %vm92_vm0, %v71_v6 }
  0x19   :  { %183 = vmatpush.bf16.msra.mxu1 %v267_v7 }
  0x1d   :  { %184 = vmatpush.bf16.msra.mxu1 %v266_v8 }
  0x21   :  { %185 = vmatpush.bf16.msra.mxu1 %v265_v9 }
  0x25   :  { %186 = vmatpush.bf16.msra.mxu1 %v264_v10 }
  0x29   :  { %187 = vmatpush.bf16.msra.mxu1 %v263_v11 }
  0x2d   :  { %188 = vmatpush.bf16.msra.mxu1 %v262_v12 }
  0x94   :  { %v105_v13 = vpop.f32.mrf.mxu0 }
  0x95   :  { %v106_v15 = vadd.f32 %v278_v14, %v105_v13 }
  0x97   :  { %v110_v18 = vmax.f32 %v106_v15, 0.0 }
  0x9c   :  { %v107_v16 = vpop.f32.mrf.mxu0 }
  0x9d   :  { %v108_v17 = vadd.f32 %v278_v14, %v107_v16 }
  0x9f   :  { %v111_v19 = vmax.f32 %v108_v17, 0.0 }
  0xa1   :  { %v112_v20 = vpack.c.bf16 %v111_v19, %v110_v18 }
  0xa3   :  { %189 = vmatmul.bf16.vlgmr.msra.gmra.mxu1 %v112_v20 }
 0x120   :  { %v190_v22 = vpop.f32.mrf.mxu1 }
 0x121   :  { %v191_v23 = vadd.f32 %v279_v21, %v190_v22 }
 0x123   :  { %v195_v24 = vmax.f32 %v191_v23, 0.0 }
 0x125   :  { %197 = vst [vmem:[#allocation8] sm:$0xff] %v195_v24 }
 0x128   :  { %v192_v25 = vpop.f32.mrf.mxu1 }
 0x129   :  { %v193_v26 = vadd.f32 %v279_v21, %v192_v25 }
 0x12b   :  { %v196_v27 = vmax.f32 %v193_v26, 0.0 }
 0x12d   :  { %198 = vst [vmem:[#allocation8 + $0x8] sm:$0xff] %v196_v27 }
 0x12e   :  { %211 = dma.vmem_to_hbm [thread:$0]  %s204_s14, 256, %s206_s16, [#allocation4], %s386_s30, %s386_s30, %s387_s6  }
 0x12f   :  { %380 = dma.done.wait [#allocation4], 256  }
 0x130   :  { %381 = vsyncadd [#allocation4], 4294967040 }
 0x131   :  { %216 = vsyncpa [#allocation3], 1 }
 0x132   :  { %217 = vsyncpa [#allocation6], 1 }
 0x133   :  { %218 = vsyncpa [#allocation4], 1 }

// kernel: tpu_custom_call.1
= control target key start
LH: loop header
LB: loop body
LE: loop exit
PB: predicated region body
PF: predicated region fallthrough
CT: control target
= control target key end

     0   :  { %10 = vsyncpa [#allocation3], 0  ;;  %s444_s0 = inlined_call_operand.hbm [shape: f32[16,32], index: 0, kind: input, shape index: {}]   ;;  %s445_s1 = inlined_call_operand.hbm [shape: bf16[32,128], index: 1, kind: input, shape index: {}]   ;;  %s446_s2 = inlined_call_operand.vmem [shape: f32[1,128], index: 2, kind: input, shape index: {}]   ;;  %s447_s3 = inlined_call_operand.hbm [shape: bf16[128,128], index: 3, kind: input, shape index: {}]   ;;  %s448_s4 = inlined_call_operand.vmem [shape: f32[1,128], index: 4, kind: input, shape index: {}]   ;;  %s449_s5 = inlined_call_operand.hbm [shape: f32[16,128], index: 5, kind: output, shape index: {}]  }
   0x1   :  { %11 = vsyncpa [#allocation6], 0  ;;  %s30_s20 = sshll.u32 %s445_s1, 4  ;;  %s31_s20 = int_to_ptr.hbm [resolvable:$true] %s30_s20 }
   0x2   :  { %12 = vsyncpa [#allocation4], 0  ;;  %s382_s21 = smov [#allocation5]   ;;  %s17_s25 = sshll.u32 %s444_s0, 4  ;;  %s18_s25 = int_to_ptr.hbm [resolvable:$true] %s17_s25 }
   0x3   :  { %s32_s22 = sshll.u32 %s382_s21, 4  ;;  %s383_s26 = smov 64   ;;  %s33_s22 = int_to_ptr.vmem [resolvable:$true] %s32_s22 }
   0x4   :  { %s384_s27 = smov 4   ;;  %s385_s28 = smov [#allocation2]  }
   0x5   :  { %38 = dma.hbm_to_vmem [thread:$0]  %s31_s20, 256, %s33_s22, [#allocation6], %s383_s26, %s383_s26, %s384_s27  }
   0x6   :  { %s19_s29 = sshll.u32 %s385_s28, 4  ;;  %s386_s30 = smov 128   ;;  %s20_s29 = int_to_ptr.vmem [resolvable:$true] %s19_s29 }
   0x7   :  { %s387_s6 = smov 8   ;;  %s45_s8 = sshll.u32 %s447_s3, 4  ;;  %s46_s8 = int_to_ptr.hbm [resolvable:$true] %s45_s8 }
   0x8   :  { %25 = dma.hbm_to_vmem [thread:$0]  %s18_s25, 256, %s20_s29, [#allocation3], %s386_s30, %s386_s30, %s387_s6  }
   0x9   :  { %s388_s9 = smov [#allocation7]  }
   0xa   :  { %s47_s0 = sshll.u32 %s388_s9, 4  ;;  %s48_s0 = int_to_ptr.vmem [resolvable:$true] %s47_s0 }
   0xb   :  { %53 = dma.hbm_to_vmem [thread:$0]  %s46_s8, 1024, %s48_s0, [#allocation6], %s383_s26, %s383_s26, %s384_s27  }
   0xc   :  { %376 = dma.done.wait [#allocation3], 256  }
   0xd   :  { %377 = vsyncadd [#allocation3], 4294967040 }
   0xe   :  { %378 = dma.done.wait [#allocation6], 1280  }
   0xf   :  { %379 = vsyncadd [#allocation6], 4294966016  ;;  %v261_v0 = vld [vmem:[#allocation5 + $0x8] sm:$0xff]  ;;  %v260_v1 = vld [vmem:[#allocation5] sm:$0xff]  ;;  %vm92_vm0 = vcmask 261120   ;;  %s389_s13 = smov [#allocation8]  }
  0x10   :  { %v269_v2 = vld [vmem:[#allocation7 + $0x38] sm:$0xff]  ;;  %102 = vmatpush.bf16.msra.mxu0 %v261_v0  ;;  %v69_v3 = vld [vmem:[#allocation2] sm:$0xff]  ;;  %v70_v4 = vld [vmem:[#allocation2 + $0x8] sm:$0xff]  ;;  %s203_s14 = sshll.u32 %s389_s13, 4  ;;  %s205_s16 = sshll.u32 %s449_s5, 4  ;;  %s204_s14 = int_to_ptr.vmem [resolvable:$true] %s203_s14  ;;  %s206_s16 = int_to_ptr.hbm [resolvable:$true] %s205_s16 }
  0x11   :  { %181 = vmatpush.bf16.msra.mxu1 %v269_v2  ;;  %v268_v5 = vld [vmem:[#allocation7 + $0x30] sm:$0xff]  ;;  %v71_v6 = vpack.c.bf16 %v70_v4, %v69_v3  ;;  %v267_v7 = vld [vmem:[#allocation7 + $0x28] sm:$0xff]  ;;  %v266_v8 = vld [vmem:[#allocation7 + $0x20] sm:$0xff] }
  0x12   :  { %v265_v9 = vld [vmem:[#allocation7 + $0x18] sm:$0xff]  ;;  %v264_v10 = vld [vmem:[#allocation7 + $0x10] sm:$0xff]  ;;  %v263_v11 = vld [vmem:[#allocation7 + $0x8] sm:$0xff] }
  0x13   :  { %v262_v12 = vld [vmem:[#allocation7] sm:$0xff] }
  0x14   :  { %103 = vmatpush.bf16.msra.mxu0 %v260_v1  ;;  %v278_v14 = vld [vmem:[%s446_s2] ss:$0 sm:$0xff] }
  0x15   :  { %182 = vmatpush.bf16.msra.mxu1 %v268_v5  ;;  %v279_v21 = vld [vmem:[%s448_s4] ss:$0 sm:$0xff] }
  0x17   :  { %227 = vmatmul.msk.bf16.vlgmr.msra.gmra.mxu0 %vm92_vm0, %v71_v6 }
  0x19   :  { %183 = vmatpush.bf16.msra.mxu1 %v267_v7 }
  0x1d   :  { %184 = vmatpush.bf16.msra.mxu1 %v266_v8 }
  0x21   :  { %185 = vmatpush.bf16.msra.mxu1 %v265_v9 }
  0x25   :  { %186 = vmatpush.bf16.msra.mxu1 %v264_v10 }
  0x29   :  { %187 = vmatpush.bf16.msra.mxu1 %v263_v11 }
  0x2d   :  { %188 = vmatpush.bf16.msra.mxu1 %v262_v12 }
  0x94   :  { %v105_v13 = vpop.f32.mrf.mxu0 }
  0x95   :  { %v106_v15 = vadd.f32 %v278_v14, %v105_v13 }
  0x97   :  { %v110_v18 = vmax.f32 %v106_v15, 0.0 }
  0x9c   :  { %v107_v16 = vpop.f32.mrf.mxu0 }
  0x9d   :  { %v108_v17 = vadd.f32 %v278_v14, %v107_v16 }
  0x9f   :  { %v111_v19 = vmax.f32 %v108_v17, 0.0 }
  0xa1   :  { %v112_v20 = vpack.c.bf16 %v111_v19, %v110_v18 }
  0xa3   :  { %189 = vmatmul.bf16.vlgmr.msra.gmra.mxu1 %v112_v20 }
 0x120   :  { %v190_v22 = vpop.f32.mrf.mxu1 }
 0x121   :  { %v191_v23 = vadd.f32 %v279_v21, %v190_v22 }
 0x123   :  { %v195_v24 = vmax.f32 %v191_v23, 0.0 }
 0x125   :  { %197 = vst [vmem:[#allocation8] sm:$0xff] %v195_v24 }
 0x128   :  { %v192_v25 = vpop.f32.mrf.mxu1 }
 0x129   :  { %v193_v26 = vadd.f32 %v279_v21, %v192_v25 }
 0x12b   :  { %v196_v27 = vmax.f32 %v193_v26, 0.0 }
 0x12d   :  { %198 = vst [vmem:[#allocation8 + $0x8] sm:$0xff] %v196_v27 }
 0x12e   :  { %211 = dma.vmem_to_hbm [thread:$0]  %s204_s14, 256, %s206_s16, [#allocation4], %s386_s30, %s386_s30, %s387_s6  }
 0x12f   :  { %380 = dma.done.wait [#allocation4], 256  }
 0x130   :  { %381 = vsyncadd [#allocation4], 4294967040 }
 0x131   :  { %216 = vsyncpa [#allocation3], 1 }
 0x132   :  { %217 = vsyncpa [#allocation6], 1 }
 0x133   :  { %218 = vsyncpa [#allocation4], 1 }

</bundles_post_ra>
